<compile_context>
chip_gen: v7x
topology: tpu7x:2x2x1
jax: 0.10.0
libtpu: 0.0.40
codegen_flags: <defaults>
</compile_context>

<pallas_src>
import jax
import jax.numpy as jnp
from jax.experimental import pallas as pl
from jax.experimental.pallas import tpu as pltpu

EMBED_DIM = 768
HIDDEN_TEXT = 64
HIDDEN_IMAGE = 64
HIDDEN_CAT = HIDDEN_TEXT + HIDDEN_IMAGE      # 128 -> full MXU tile width
OUTPUT_SIZE = 10
OUT_PAD = 128                                # lane-dense padded output width
BN_EPS = 1e-5
MAX_TB = 1024                                # batch tile rows for large B


# ----------------------------- Pallas kernel -------------------------------
def late_fusion_kernel(t_ref, i_ref, w1t_ref, w1i_ref, b1_ref,
                       w2_ref, b2_ref, out_ref):
    # Two K=768, N=128 bf16 MXU matmuls against zero-padded per-branch weight
    # halves; their sum realizes the feature-wise concat without any cross-lane
    # data movement or a wrapper-side concatenated copy.
    ht = jnp.dot(t_ref[...].astype(jnp.bfloat16), w1t_ref[...],
                 preferred_element_type=jnp.float32)
    hi = jnp.dot(i_ref[...].astype(jnp.bfloat16), w1i_ref[...],
                 preferred_element_type=jnp.float32)
    h = jnp.maximum(ht + hi + b1_ref[...], 0.0)       # bias + ReLU in f32 (VPU)
    # Dropout: eval-mode identity. BatchNorm1d (eval): folded into w2/b2
    # host-side.  TODO(synk): train-mode Dropout/BN would need pltpu.prng_*
    # and batch-statistics reductions.
    out = jnp.dot(h, w2_ref[...], preferred_element_type=jnp.float32)  # f32 MXU
    out_ref[...] = (out + b2_ref[...]).astype(out_ref.dtype)  # (tb,128) bf16 store


def pack_params(p):
    """Host-side algebra: fold eval-mode BN into fc2 (kept f32), zero-pad each
    branch weight to 128 output columns (bf16 MXU operands), pad fc2 to a
    lane-dense 128-wide output."""
    # BN(h) = (h - m) * rsqrt(v + eps) * g + be  =  h * s + c  (affine, post-ReLU)
    st = p["gt"] * jax.lax.rsqrt(p["vt"] + BN_EPS)
    ct = p["bet"] - p["mt"] * st
    si = p["gi"] * jax.lax.rsqrt(p["vi"] + BN_EPS)
    ci = p["bei"] - p["mi"] * si
    s_cat = jnp.concatenate([st, si], axis=1)        # (1, 128)
    c_cat = jnp.concatenate([ct, ci], axis=1)        # (1, 128)
    w2_eff = s_cat.T * p["w2"]                       # (128, 10), f32
    b2_eff = p["b2"] + c_cat @ p["w2"]               # (1, 10),   f32
    w2p = jnp.zeros((HIDDEN_CAT, OUT_PAD), jnp.float32).at[:, :OUTPUT_SIZE].set(w2_eff)
    b2p = jnp.zeros((1, OUT_PAD), jnp.float32).at[:, :OUTPUT_SIZE].set(b2_eff)
    # per-branch first-layer weights, zero-padded to the 128 concat columns
    w1t = jnp.zeros((EMBED_DIM, HIDDEN_CAT), jnp.float32).at[:, :HIDDEN_TEXT].set(p["wt"])
    w1i = jnp.zeros((EMBED_DIM, HIDDEN_CAT), jnp.float32).at[:, HIDDEN_TEXT:].set(p["wi"])
    b1 = jnp.concatenate([p["bt"], p["bi"]], axis=1)  # (1, 128)
    return dict(w1t=w1t.astype(jnp.bfloat16), w1i=w1i.astype(jnp.bfloat16),
                b1=b1, w2=w2p, b2=b2p)


def _pick_tile(B):
    """Batch tile: whole batch for tiny B (block == full dim is legal even when
    not 8-divisible); for B > 16 split into >= 2 grid steps (v7x megacore) with
    an 8-divisible tile, capped at MAX_TB."""
    if B <= 16:
        return B
    half = -(-B // 2)
    return min(MAX_TB, ((half + 7) // 8) * 8)


def late_fusion_head(text_embed, image_embed, packed):
    """Fusion head (Linear->ReLU->Dropout(eval)->BN(eval) per branch, concat,
    fc2) as a single batch-tiled Pallas call over the two embeddings."""
    B = text_embed.shape[0]
    tb = _pick_tile(B)
    b_pad = pl.cdiv(B, tb) * tb
    if b_pad != B:
        pad = ((0, b_pad - B), (0, 0))
        text_embed = jnp.pad(text_embed, pad)
        image_embed = jnp.pad(image_embed, pad)

    const_kw = dict(pipeline_mode=pl.Buffered(1))    # weights never change block

    out = pl.pallas_call(
        late_fusion_kernel,
        out_shape=jax.ShapeDtypeStruct((b_pad, OUT_PAD), jnp.bfloat16),
        grid_spec=pltpu.PrefetchScalarGridSpec(
            num_scalar_prefetch=0,
            grid=(b_pad // tb,),
            in_specs=[
                pl.BlockSpec((tb, EMBED_DIM), lambda b: (b, 0)),
                pl.BlockSpec((tb, EMBED_DIM), lambda b: (b, 0)),
                pl.BlockSpec((EMBED_DIM, HIDDEN_CAT), lambda b: (0, 0), **const_kw),
                pl.BlockSpec((EMBED_DIM, HIDDEN_CAT), lambda b: (0, 0), **const_kw),
                pl.BlockSpec((1, HIDDEN_CAT), lambda b: (0, 0), **const_kw),
                pl.BlockSpec((HIDDEN_CAT, OUT_PAD), lambda b: (0, 0), **const_kw),
                pl.BlockSpec((1, OUT_PAD), lambda b: (0, 0), **const_kw),
            ],
            out_specs=pl.BlockSpec((tb, OUT_PAD), lambda b: (b, 0)),
        ),
        compiler_params=pltpu.CompilerParams(
            dimension_semantics=("parallel",),
            vmem_limit_bytes=32 * 1024 * 1024,       # fits tb=1024 on v5e too
        ),
    )(text_embed, image_embed, packed["w1t"], packed["w1i"],
      packed["b1"], packed["w2"], packed["b2"])
    return out[:B, :OUTPUT_SIZE].astype(jnp.float32)


# --------------------------- parameter init --------------------------------
def _linear_init(key, fan_in, fan_out):
    kw, kb = jax.random.split(key)
    bound = 1.0 / jnp.sqrt(jnp.float32(fan_in))
    w = jax.random.uniform(kw, (fan_in, fan_out), jnp.float32, -bound, bound)
    b = jax.random.uniform(kb, (1, fan_out), jnp.float32, -bound, bound)
    return w, b


def _bn_init(key, n):
    kg, kb, km, kv = jax.random.split(key, 4)
    # Non-trivial BN params/stats so the BN->fc2 fold is actually exercised.
    g = jax.random.uniform(kg, (1, n), jnp.float32, 0.5, 1.5)
    be = 0.1 * jax.random.normal(kb, (1, n), jnp.float32)
    m = 0.05 * jax.random.normal(km, (1, n), jnp.float32)
    v = jax.random.uniform(kv, (1, n), jnp.float32, 0.5, 1.5)
    return g, be, m, v


def init_params(key):
    k = jax.random.split(key, 5)
    wt, bt = _linear_init(k[0], EMBED_DIM, HIDDEN_TEXT)
    wi, bi = _linear_init(k[1], EMBED_DIM, HIDDEN_IMAGE)
    w2, b2 = _linear_init(k[2], HIDDEN_CAT, OUTPUT_SIZE)
    gt, bet, mt, vt = _bn_init(k[3], HIDDEN_TEXT)
    gi, bei, mi, vi = _bn_init(k[4], HIDDEN_IMAGE)
    return dict(wt=wt, bt=bt, gt=gt, bet=bet, mt=mt, vt=vt,
                wi=wi, bi=bi, gi=gi, bei=bei, mi=mi, vi=vi,
                w2=w2, b2=b2)


# --------------------------- backbone stubs ---------------------------------
# TODO(synk): the original text_model / image_model are arbitrary frozen
# backbones (e.g. BERT / ViT) with no architecture given in the module; they
# are replaced by deterministic JAX stubs producing 768-dim embeddings.
def stub_text_model(input_ids, attention_mask, embed_table):
    emb = jnp.take(embed_table, input_ids, axis=0)               # (B, S, 768)
    mask = attention_mask[..., None].astype(jnp.float32)         # (B, S, 1)
    denom = jnp.maximum(mask.sum(axis=1), 1.0)
    return (emb * mask).sum(axis=1) / denom                      # (B, 768)


def stub_image_model(image_nchw, proj):
    pooled = image_nchw.mean(axis=(2, 3))                        # (B, C)
    return pooled @ proj                                         # (B, 768)


# -------------------------------- reference --------------------------------
def reference_head(text_embed, image_embed, p, matmul1_dtype=jnp.float32):
    """Unfolded reference matching PyTorch eval-mode semantics.  matmul1_dtype
    optionally mirrors the kernel's bf16 first-matmul operands (second matmul
    is f32 in the kernel)."""
    def branch(x, w, b, g, be, m, v):
        h = jnp.dot(x.astype(matmul1_dtype), w.astype(matmul1_dtype),
                    preferred_element_type=jnp.float32)
        h = jnp.maximum(h + b, 0.0)                              # Linear+ReLU
        return (h - m) * jax.lax.rsqrt(v + BN_EPS) * g + be      # BN (eval)

    ht = branch(text_embed, p["wt"], p["bt"], p["gt"], p["bet"], p["mt"], p["vt"])
    hi = branch(image_embed, p["wi"], p["bi"], p["gi"], p["bei"], p["mi"], p["vi"])
    h = jnp.concatenate([ht, hi], axis=1)
    return jnp.dot(h, p["w2"], preferred_element_type=jnp.float32) + p["b2"]


def _check(text_embed, image_embed, params, packed):
    out = jax.block_until_ready(late_fusion_head(text_embed, image_embed, packed))
    assert out.shape == (text_embed.shape[0], OUTPUT_SIZE)
    # tight check vs. reference with matching bf16 first-matmul precision
    ref_bf16 = reference_head(text_embed, image_embed, params,
                              matmul1_dtype=jnp.bfloat16)
    assert jnp.allclose(out, ref_bf16, atol=1e-2, rtol=1e-2)
    # loose check vs. full-f32 reference (bf16 operands / bf16 logit store)
    ref_f32 = reference_head(text_embed, image_embed, params)
    assert jnp.allclose(out, ref_f32, atol=5e-2, rtol=5e-2)


if __name__ == "__main__":
    key = jax.random.PRNGKey(0)
    k_param, k_ids, k_img, k_tab, k_proj = jax.random.split(key, 5)

    B, S, VOCAB = 2, 8, 50
    C, H, W = 3, 16, 16

    params = init_params(k_param)
    packed = pack_params(params)

    # deterministic synthetic inputs
    input_ids = jax.random.randint(k_ids, (B, S), 0, VOCAB)
    attention_mask = jnp.ones((B, S), jnp.int32)
    image = jax.random.normal(k_img, (B, C, H, W), jnp.float32)   # NCHW

    embed_table = jax.random.normal(k_tab, (VOCAB, EMBED_DIM), jnp.float32) * 0.02
    img_proj = jax.random.normal(k_proj, (C, EMBED_DIM), jnp.float32) * 0.1

    # backbones (plain JAX glue) -> 768-dim embeddings
    text_embed = stub_text_model(input_ids, attention_mask, embed_table)
    image_embed = stub_image_model(image, img_proj)

    # fusion head in Pallas (single-block path, B=2)
    _check(text_embed, image_embed, params, packed)

    # also exercise the multi-step grid + batch-padding path (B=40 -> tb=24,
    # b_pad=48, grid=(2,)) with tiled copies of the same embeddings
    reps = 20
    _check(jnp.tile(text_embed, (reps, 1)), jnp.tile(image_embed, (reps, 1)),
           params, packed)

    print("KERNEL_OK")
</pallas_src>

<mosaic_0001>
module attributes {stable_mosaic.version = 11 : i64} {
  func.func @late_fusion_kernel(%arg0: i32, %arg1: memref<2x768xf32, #tpu.memory_space<vmem>>, %arg2: memref<2x768xf32, #tpu.memory_space<vmem>>, %arg3: memref<768x128xbf16, #tpu.memory_space<vmem>>, %arg4: memref<768x128xbf16, #tpu.memory_space<vmem>>, %arg5: memref<1x128xf32, #tpu.memory_space<vmem>>, %arg6: memref<128x128xf32, #tpu.memory_space<vmem>>, %arg7: memref<1x128xf32, #tpu.memory_space<vmem>>, %arg8: memref<2x128xbf16, #tpu.memory_space<vmem>>) attributes {dimension_semantics = [#tpu.dimension_semantics<parallel>], iteration_bounds = array<i64: 1>, scalar_prefetch = 0 : i64, scratch_operands = 0 : i64, tpu.core_type = #tpu.core_type<tc>, window_params = [{transform_indices = @transform_0, window_bounds = array<i64: 2, 768>}, {transform_indices = @transform_1, window_bounds = array<i64: 2, 768>}, {pipeline_mode = #tpu.pipeline_mode<synchronous>, transform_indices = @transform_2, window_bounds = array<i64: 768, 128>}, {pipeline_mode = #tpu.pipeline_mode<synchronous>, transform_indices = @transform_3, window_bounds = array<i64: 768, 128>}, {pipeline_mode = #tpu.pipeline_mode<synchronous>, transform_indices = @transform_4, window_bounds = array<i64: 1, 128>}, {pipeline_mode = #tpu.pipeline_mode<synchronous>, transform_indices = @transform_5, window_bounds = array<i64: 128, 128>}, {pipeline_mode = #tpu.pipeline_mode<synchronous>, transform_indices = @transform_6, window_bounds = array<i64: 1, 128>}, {transform_indices = @transform_7, window_bounds = array<i64: 2, 128>}]} {
    %c0 = arith.constant 0 : index
    %c0_0 = arith.constant 0 : index
    %0 = vector.load %arg1[%c0, %c0_0] : memref<2x768xf32, #tpu.memory_space<vmem>>, vector<2x768xf32>
    %1 = arith.truncf %0 : vector<2x768xf32> to vector<2x768xbf16>
    %c0_1 = arith.constant 0 : index
    %c0_2 = arith.constant 0 : index
    %2 = vector.load %arg3[%c0_1, %c0_2] : memref<768x128xbf16, #tpu.memory_space<vmem>>, vector<768x128xbf16>
    %cst = arith.constant dense<0.000000e+00> : vector<2x128xf32>
    %3 = tpu.matmul %1, %2, %cst {dimension_numbers = #tpu.dot_dimension_numbers<[1], [0], [0], [1], [0, 0, 1, 1], [], []>} : vector<2x768xbf16>, vector<768x128xbf16>, vector<2x128xf32> -> vector<2x128xf32>
    %c0_3 = arith.constant 0 : index
    %c0_4 = arith.constant 0 : index
    %4 = vector.load %arg2[%c0_3, %c0_4] : memref<2x768xf32, #tpu.memory_space<vmem>>, vector<2x768xf32>
    %5 = arith.truncf %4 : vector<2x768xf32> to vector<2x768xbf16>
    %c0_5 = arith.constant 0 : index
    %c0_6 = arith.constant 0 : index
    %6 = vector.load %arg4[%c0_5, %c0_6] : memref<768x128xbf16, #tpu.memory_space<vmem>>, vector<768x128xbf16>
    %cst_7 = arith.constant dense<0.000000e+00> : vector<2x128xf32>
    %7 = tpu.matmul %5, %6, %cst_7 {dimension_numbers = #tpu.dot_dimension_numbers<[1], [0], [0], [1], [0, 0, 1, 1], [], []>} : vector<2x768xbf16>, vector<768x128xbf16>, vector<2x128xf32> -> vector<2x128xf32>
    %8 = arith.addf %3, %7 : vector<2x128xf32>
    %c0_8 = arith.constant 0 : index
    %c0_9 = arith.constant 0 : index
    %9 = vector.load %arg5[%c0_8, %c0_9] : memref<1x128xf32, #tpu.memory_space<vmem>>, vector<1x128xf32>
    %10 = vector.broadcast %9 : vector<1x128xf32> to vector<2x128xf32>
    %11 = arith.addf %8, %10 : vector<2x128xf32>
    %cst_10 = arith.constant 0.000000e+00 : f32
    %12 = vector.broadcast %cst_10 : f32 to vector<2x128xf32>
    %13 = arith.maximumf %11, %12 : vector<2x128xf32>
    %c0_11 = arith.constant 0 : index
    %c0_12 = arith.constant 0 : index
    %14 = vector.load %arg6[%c0_11, %c0_12] : memref<128x128xf32, #tpu.memory_space<vmem>>, vector<128x128xf32>
    %cst_13 = arith.constant dense<0.000000e+00> : vector<2x128xf32>
    %15 = tpu.matmul %13, %14, %cst_13 {dimension_numbers = #tpu.dot_dimension_numbers<[1], [0], [0], [1], [0, 0, 1, 1], [], []>} : vector<2x128xf32>, vector<128x128xf32>, vector<2x128xf32> -> vector<2x128xf32>
    %c0_14 = arith.constant 0 : index
    %c0_15 = arith.constant 0 : index
    %16 = vector.load %arg7[%c0_14, %c0_15] : memref<1x128xf32, #tpu.memory_space<vmem>>, vector<1x128xf32>
    %17 = vector.broadcast %16 : vector<1x128xf32> to vector<2x128xf32>
    %18 = arith.addf %15, %17 : vector<2x128xf32>
    %19 = arith.truncf %18 : vector<2x128xf32> to vector<2x128xbf16>
    %c0_16 = arith.constant 0 : index
    %c0_17 = arith.constant 0 : index
    %20 = vector.load %arg8[%c0_16, %c0_17] : memref<2x128xbf16, #tpu.memory_space<vmem>>, vector<2x128xbf16>
    tpu.vector_store %arg8[%c0_16, %c0_17], %19 {strides = array<i32>} : memref<2x128xbf16, #tpu.memory_space<vmem>>, vector<2x128xbf16>,
    return
  }
  func.func @transform_0(%arg0: i32) -> (i32, i32) {
    %c0_i32 = arith.constant 0 : i32
    %c0_i32_0 = arith.constant 0 : i32
    return %arg0, %c0_i32 : i32, i32
  }
  func.func @transform_1(%arg0: i32) -> (i32, i32) {
    %c0_i32 = arith.constant 0 : i32
    %c0_i32_0 = arith.constant 0 : i32
    return %arg0, %c0_i32 : i32, i32
  }
  func.func @transform_2(%arg0: i32) -> (i32, i32) {
    %c0_i32 = arith.constant 0 : i32
    %c0_i32_0 = arith.constant 0 : i32
    %c0_i32_1 = arith.constant 0 : i32
    return %c0_i32, %c0_i32_0 : i32, i32
  }
  func.func @transform_3(%arg0: i32) -> (i32, i32) {
    %c0_i32 = arith.constant 0 : i32
    %c0_i32_0 = arith.constant 0 : i32
    %c0_i32_1 = arith.constant 0 : i32
    return %c0_i32, %c0_i32_0 : i32, i32
  }
  func.func @transform_4(%arg0: i32) -> (i32, i32) {
    %c0_i32 = arith.constant 0 : i32
    %c0_i32_0 = arith.constant 0 : i32
    %c0_i32_1 = arith.constant 0 : i32
    return %c0_i32, %c0_i32_0 : i32, i32
  }
  func.func @transform_5(%arg0: i32) -> (i32, i32) {
    %c0_i32 = arith.constant 0 : i32
    %c0_i32_0 = arith.constant 0 : i32
    %c0_i32_1 = arith.constant 0 : i32
    return %c0_i32, %c0_i32_0 : i32, i32
  }
  func.func @transform_6(%arg0: i32) -> (i32, i32) {
    %c0_i32 = arith.constant 0 : i32
    %c0_i32_0 = arith.constant 0 : i32
    %c0_i32_1 = arith.constant 0 : i32
    return %c0_i32, %c0_i32_0 : i32, i32
  }
  func.func @transform_7(%arg0: i32) -> (i32, i32) {
    %c0_i32 = arith.constant 0 : i32
    %c0_i32_0 = arith.constant 0 : i32
    return %arg0, %c0_i32 : i32, i32
  }
}

</mosaic_0001>

<bundles_post_ra>
// kernel: tpu_custom_call.1
= control target key start
LH: loop header
LB: loop body
LE: loop exit
PB: predicated region body
PF: predicated region fallthrough
CT: control target
= control target key end

     0   :  { %12 = vsyncpa [#allocation3], 0  ;;  %s2013_s0 = inlined_call_operand.hbm [shape: f32[2,768], index: 0, kind: input, shape index: {}]   ;;  %s2014_s1 = inlined_call_operand.hbm [shape: f32[2,768], index: 1, kind: input, shape index: {}]   ;;  %s2015_s2 = inlined_call_operand.hbm [shape: bf16[768,128], index: 2, kind: input, shape index: {}]   ;;  %s2016_s3 = inlined_call_operand.hbm [shape: bf16[768,128], index: 3, kind: input, shape index: {}]   ;;  %s2017_s4 = inlined_call_operand.vmem [shape: f32[1,128], index: 4, kind: input, shape index: {}]   ;;  %s2018_s5 = inlined_call_operand.hbm [shape: f32[128,128], index: 5, kind: input, shape index: {}]   ;;  %s2019_s6 = inlined_call_operand.vmem [shape: f32[1,128], index: 6, kind: input, shape index: {}]   ;;  %s2020_s7 = inlined_call_operand.hbm [shape: bf16[2,128], index: 7, kind: output, shape index: {}]  }
   0x1   :  { %13 = vsyncpa [#allocation6], 0 }
   0x2   :  { %14 = vsyncpa [#allocation9], 0 }
   0x3   :  { %15 = vsyncpa [#allocation4], 0  ;;  %s1863_s24 = smov [#allocation5]   ;;  %s1723_s28 = scalar_lea.hbm %s2014_s1, 192 }
   0x4   :  { %s32_s25 = sshll.u32 %s1863_s24, 4  ;;  %p1724_p0 = scmp.ne.s32.totalorder %s2014_s1, %s1723_s28  ;;  %s33_s25 = int_to_ptr.vmem [resolvable:$true] %s32_s25 }
   0x5   :  { %p1727_p1 = scmp.lt.u32.totalorder %s1723_s28, %s2014_s1 }
   0x7   :  { %p1729_p2 = pnand %p1727_p1, %p1724_p0 }
   0x9   :  { %1732 = shalt.err (!%p1729_p2)
}
   0xa   :  { %s1733_s10 = scalar_lea.vmem %s33_s25, 192  ;;  %p1738_p4 = scmp.lt.s32.totalorder %s33_s25, %s33_s25 }
   0xb   :  { %p1734_p3 = scmp.ne.s32.totalorder %s33_s25, %s1733_s10  ;;  %p1739_p5 = scmp.lt.s32.totalorder %s1733_s10, %s1733_s10 }
   0xd   :  { %p1740_p6 = por %p1739_p5, %p1738_p4 }
   0xf   :  { %p1741_p7 = pnand %p1740_p6, %p1734_p3 }
  0x11   :  { %1744 = shalt.err (!%p1741_p7)
}
  0x12   :  { %35 = dma.hbm_to_vmem [thread:$0]  %s2014_s1, 192, %s33_s25, [#allocation6]  }
  0x13   :  { %s1864_s13 = smov [#allocation8]   ;;  %s1865_s15 = smov [#allocation2]  }
  0x14   :  { %s53_s14 = sshll.u32 %s1864_s13, 4  ;;  %s22_s16 = sshll.u32 %s1865_s15, 4  ;;  %s54_s14 = int_to_ptr.vmem [resolvable:$true] %s53_s14  ;;  %s23_s16 = int_to_ptr.vmem [resolvable:$true] %s22_s16 }
  0x15   :  { %s1745_s19 = scalar_lea.hbm %s2016_s3, 6144 }
  0x16   :  { %p1746_p8 = scmp.ne.s32.totalorder %s2016_s3, %s1745_s19  ;;  %p1749_p9 = scmp.lt.u32.totalorder %s1745_s19, %s2016_s3 }
  0x18   :  { %p1751_p10 = pnand %p1749_p9, %p1746_p8 }
  0x1a   :  { %1754 = shalt.err (!%p1751_p10)
}
  0x1b   :  { %s1755_s1 = scalar_lea.vmem %s54_s14, 6144  ;;  %p1760_p12 = scmp.lt.s32.totalorder %s54_s14, %s54_s14 }
  0x1c   :  { %p1756_p11 = scmp.ne.s32.totalorder %s54_s14, %s1755_s1  ;;  %p1761_p13 = scmp.lt.s32.totalorder %s1755_s1, %s1755_s1 }
  0x1e   :  { %p1762_p0 = por %p1761_p13, %p1760_p12 }
  0x20   :  { %p1763_p1 = pnand %p1762_p0, %p1756_p11 }
  0x22   :  { %1766 = shalt.err (!%p1763_p1)
}
  0x23   :  { %s1866_s24 = smov 64   ;;  %s1867_s25 = smov 4  }
  0x24   :  { %59 = dma.hbm_to_vmem [thread:$0]  %s2016_s3, 6144, %s54_s14, [#allocation9], %s1866_s24, %s1866_s24, %s1867_s25  }
  0x25   :  { %s1767_s30 = scalar_lea.hbm %s2013_s0, 192 }
  0x26   :  { %p1768_p2 = scmp.ne.s32.totalorder %s2013_s0, %s1767_s30  ;;  %p1771_p3 = scmp.lt.u32.totalorder %s1767_s30, %s2013_s0 }
  0x28   :  { %p1773_p4 = pnand %p1771_p3, %p1768_p2 }
  0x2a   :  { %1776 = shalt.err (!%p1773_p4)
}
  0x2b   :  { %s1777_s12 = scalar_lea.vmem %s23_s16, 192  ;;  %p1782_p6 = scmp.lt.s32.totalorder %s23_s16, %s23_s16 }
  0x2c   :  { %p1778_p5 = scmp.ne.s32.totalorder %s23_s16, %s1777_s12  ;;  %p1783_p7 = scmp.lt.s32.totalorder %s1777_s12, %s1777_s12 }
  0x2e   :  { %p1784_p8 = por %p1783_p7, %p1782_p6 }
  0x30   :  { %p1785_p9 = pnand %p1784_p8, %p1778_p5 }
  0x32   :  { %1788 = shalt.err (!%p1785_p9)
}
  0x33   :  { %25 = dma.hbm_to_vmem [thread:$0]  %s2013_s0, 192, %s23_s16, [#allocation3]  }
  0x34   :  { %s1868_s14 = smov [#allocation7]   ;;  %s1869_s17 = smov [#allocation10]  }
  0x35   :  { %s41_s15 = sshll.u32 %s1868_s14, 4  ;;  %s67_s18 = sshll.u32 %s1869_s17, 4  ;;  %s42_s15 = int_to_ptr.vmem [resolvable:$true] %s41_s15  ;;  %s68_s18 = int_to_ptr.vmem [resolvable:$true] %s67_s18 }
  0x36   :  { %s1789_s21 = scalar_lea.hbm %s2015_s2, 6144 }
  0x37   :  { %p1790_p10 = scmp.ne.s32.totalorder %s2015_s2, %s1789_s21  ;;  %p1793_p11 = scmp.lt.u32.totalorder %s1789_s21, %s2015_s2 }
  0x39   :  { %p1795_p12 = pnand %p1793_p11, %p1790_p10 }
  0x3b   :  { %1798 = shalt.err (!%p1795_p12)
}
  0x3c   :  { %s1799_s0 = scalar_lea.vmem %s42_s15, 6144  ;;  %p1804_p0 = scmp.lt.s32.totalorder %s42_s15, %s42_s15 }
  0x3d   :  { %p1800_p13 = scmp.ne.s32.totalorder %s42_s15, %s1799_s0  ;;  %p1805_p1 = scmp.lt.s32.totalorder %s1799_s0, %s1799_s0 }
  0x3f   :  { %p1806_p2 = por %p1805_p1, %p1804_p0 }
  0x41   :  { %p1807_p3 = pnand %p1806_p2, %p1800_p13 }
  0x43   :  { %1810 = shalt.err (!%p1807_p3)
}
  0x44   :  { %47 = dma.hbm_to_vmem [thread:$0]  %s2015_s2, 6144, %s42_s15, [#allocation6], %s1866_s24, %s1866_s24, %s1867_s25  }
  0x45   :  { %s1811_s30 = scalar_lea.hbm %s2018_s5, 2048 }
  0x46   :  { %p1812_p4 = scmp.ne.s32.totalorder %s2018_s5, %s1811_s30  ;;  %p1815_p5 = scmp.lt.u32.totalorder %s1811_s30, %s2018_s5 }
  0x48   :  { %p1817_p6 = pnand %p1815_p5, %p1812_p4 }
  0x4a   :  { %1820 = shalt.err (!%p1817_p6)
}
  0x4b   :  { %s1821_s12 = scalar_lea.vmem %s68_s18, 2048  ;;  %p1826_p8 = scmp.lt.s32.totalorder %s68_s18, %s68_s18 }
  0x4c   :  { %p1822_p7 = scmp.ne.s32.totalorder %s68_s18, %s1821_s12  ;;  %p1827_p9 = scmp.lt.s32.totalorder %s1821_s12, %s1821_s12 }
  0x4e   :  { %p1828_p10 = por %p1827_p9, %p1826_p8 }
  0x50   :  { %p1829_p11 = pnand %p1828_p10, %p1822_p7 }
  0x52   :  { %1832 = shalt.err (!%p1829_p11)
}
  0x53   :  { %s1870_s2 = smov 128   ;;  %s1871_s24 = smov 8  }
  0x54   :  { %73 = dma.hbm_to_vmem [thread:$0]  %s2018_s5, 2048, %s68_s18, [#allocation9], %s1870_s2, %s1870_s2, %s1871_s24  }
  0x55   :  { %1855 = dma.done.wait [#allocation3], 192  }
  0x56   :  { %1856 = vsyncadd [#allocation3], 4294967104 }
  0x57   :  { %1857 = dma.done.wait [#allocation6], 6336  }
  0x58   :  { %1858 = vsyncadd [#allocation6], 4294960960 }
  0x59   :  { %1859 = dma.done.wait [#allocation9], 8192  }
  0x5a   :  { %1860 = vsyncadd [#allocation9], 4294959104  ;;  %v1625_v0 = vld [vmem:[#allocation8 + $0x40] sm:$0xff]   ;;  %v1629_v4 = vld [vmem:[#allocation8 + $0x48] sm:$0xff]   ;;  %v1872_v22 = vmov 1983009808   ;;  %v100_v24 = vlaneseq }
  0x5b   :  { %v1626_v1 = vld [vmem:[#allocation8 + $0xc0] sm:$0xff]   ;;  %1403 = vmatprep.subr.bf16.mxu0 %v1625_v0  ;;  %v1630_v5 = vld [vmem:[#allocation8 + $0xc8] sm:$0xff]   ;;  %v1633_v8 = vld [vmem:[#allocation8 + $0x50] sm:$0xff]   ;;  %v98_v23 = vunpack.c.l.s4 %v1872_v22  ;;  %vm1874_vm0 = vmmov 0   ;;  %s1876_s17 = smov [#allocation11]  }
  0x5c   :  { %v1627_v2 = vld [vmem:[#allocation8] sm:$0xff]   ;;  %1425 = vmatprep.subr.bf16.mxu1 %v1626_v1  ;;  %v1631_v6 = vld [vmem:[#allocation8 + $0x8] sm:$0xff]   ;;  %v1634_v9 = vld [vmem:[#allocation8 + $0xd0] sm:$0xff]   ;;  %v101_v30 = vshrl.u32 %v100_v24, 7  ;;  %s1292_s18 = sshll.u32 %s1876_s17, 4  ;;  %s1293_s18 = int_to_ptr.vmem [resolvable:$true] %s1292_s18 }
  0x5d   :  { %v1628_v3 = vld [vmem:[#allocation8 + $0x80] sm:$0xff]   ;;  %1404 = vmatpush3.bf16.msra.mxu0 %v1627_v2  ;;  %v1632_v7 = vld [vmem:[#allocation8 + $0x88] sm:$0xff]   ;;  %v1635_v10 = vld [vmem:[#allocation8 + $0x10] sm:$0xff]   ;;  %v99_v29 = vunpack.c.0.s8 %v98_v23  ;;  %s1833_s19 = scalar_lea.vmem %s1293_s18, 16  ;;  %p1838_p13 = scmp.lt.s32.totalorder %s1293_s18, %s1293_s18 }
  0x5e   :  { %1426 = vmatpush3.bf16.msra.mxu1 %v1628_v3  ;;  %1405 = vmatprep.subr.bf16.mxu0 %v1629_v4  ;;  %v1636_v11 = vld [vmem:[#allocation8 + $0x90] sm:$0xff]   ;;  %v1637_v12 = vld [vmem:[#allocation8 + $0x58] sm:$0xff]   ;;  %v1641_v16 = vld [vmem:[#allocation8 + $0x60] sm:$0xff]   ;;  %p1834_p12 = scmp.ne.s32.totalorder %s1293_s18, %s1833_s19 }
  0x5f   :  { %1427 = vmatprep.subr.bf16.mxu1 %v1630_v5  ;;  %v1638_v13 = vld [vmem:[#allocation8 + $0xd8] sm:$0xff]   ;;  %v1642_v17 = vld [vmem:[#allocation8 + $0xe0] sm:$0xff]   ;;  %v1645_v20 = vld [vmem:[#allocation8 + $0x68] sm:$0xff]   ;;  %v1983_v35 = vsub.s32 %v99_v29, %v101_v30 }
  0x60   :  { %v1639_v14 = vld [vmem:[#allocation8 + $0x18] sm:$0xff]   ;;  %v1643_v18 = vld [vmem:[#allocation8 + $0x20] sm:$0xff]   ;;  %v1646_v21 = vld [vmem:[#allocation8 + $0xe8] sm:$0xff]  }
  0x61   :  { %1406 = vmatpush3.bf16.msra.mxu0 %v1631_v6  ;;  %v1640_v15 = vld [vmem:[#allocation8 + $0x98] sm:$0xff]   ;;  %v1644_v19 = vld [vmem:[#allocation8 + $0xa0] sm:$0xff]   ;;  %v1647_v25 = vld [vmem:[#allocation8 + $0x28] sm:$0xff]  }
  0x62   :  { %1428 = vmatpush3.bf16.msra.mxu1 %v1632_v7  ;;  %1407 = vmatprep.subr.bf16.mxu0 %v1633_v8  ;;  %v1648_v26 = vld [vmem:[#allocation8 + $0xa8] sm:$0xff]   ;;  %v1649_v27 = vld [vmem:[#allocation8 + $0x70] sm:$0xff]   ;;  %v1653_v33 = vld [vmem:[#allocation8 + $0x78] sm:$0xff]  }
  0x63   :  { %1429 = vmatprep.subr.bf16.mxu1 %v1634_v9  ;;  %v1650_v28 = vld [vmem:[#allocation8 + $0xf0] sm:$0xff]   ;;  %v1654_v34 = vld [vmem:[#allocation8 + $0xf8] sm:$0xff]   ;;  %v1658_v41 = vld [vmem:[#allocation8 + $0x140] sm:$0xff]  }
  0x64   :  { %v1651_v31 = vld [vmem:[#allocation8 + $0x30] sm:$0xff]   ;;  %v1655_v36 = vld [vmem:[#allocation8 + $0x38] sm:$0xff]   ;;  %v1659_v42 = vld [vmem:[#allocation7 + $0x40] sm:$0xff]  }
  0x65   :  { %1408 = vmatpush3.bf16.msra.mxu0 %v1635_v10  ;;  %v1652_v32 = vld [vmem:[#allocation8 + $0xb0] sm:$0xff]   ;;  %v1656_v37 = vld [vmem:[#allocation8 + $0xb8] sm:$0xff]   ;;  %v1660_v48 = vld [vmem:[#allocation8 + $0x100] sm:$0xff]  }
  0x66   :  { %1430 = vmatpush3.bf16.msra.mxu1 %v1636_v11  ;;  %1409 = vmatprep.subr.bf16.mxu0 %v1637_v12  ;;  %v229_v38 = vld [vmem:[#allocation5] sm:$0xff]  ;;  %v1662_v50 = vld [vmem:[#allocation8 + $0x148] sm:$0xff]   ;;  %v1661_v52 = vld [vmem:[#allocation7] sm:$0xff]  }
  0x67   :  { %1431 = vmatprep.subr.bf16.mxu1 %v1638_v13  ;;  %v240_v39 = vrot.slane %v229_v38, %v1983_v35  ;;  %v233_v40 = vcombine.high %v229_v38, %v229_v38  ;;  %v1663_v53 = vld [vmem:[#allocation7 + $0x48] sm:$0xff]   ;;  %v1666_v55 = vld [vmem:[#allocation8 + $0x150] sm:$0xff]   ;;  %v1670_v59 = vld [vmem:[#allocation8 + $0x158] sm:$0xff]  }
  0x68   :  { %v1664_v54 = vld [vmem:[#allocation8 + $0x108] sm:$0xff]   ;;  %v1667_v57 = vld [vmem:[#allocation7 + $0x50] sm:$0xff]   ;;  %v1671_v61 = vld [vmem:[#allocation7 + $0x58] sm:$0xff]  }
  0x69   :  { %1410 = vmatpush3.bf16.msra.mxu0 %v1639_v14  ;;  %v248_v43 = vcombine.high %v240_v39, %v240_v39  ;;  %v247_v44 = vrot.slane %v233_v40, %v1983_v35  ;;  %v264_v45 = vpack.c.bf16 %v240_v39, %v240_v39  ;;  %v1665_v56 = vld [vmem:[#allocation7 + $0x8] sm:$0xff]   ;;  %v1668_v58 = vld [vmem:[#allocation8 + $0x110] sm:$0xff]   ;;  %v1672_v62 = vld [vmem:[#allocation8 + $0x118] sm:$0xff]  }
  0x6a   :  { %1432 = vmatpush3.bf16.msra.mxu1 %v1640_v15  ;;  %1411 = vmatprep.subr.bf16.mxu0 %v1641_v16  ;;  %v1669_v60 = vld [vmem:[#allocation7 + $0x10] sm:$0xff]   ;;  %v1674_v63 = vld [vmem:[#allocation8 + $0x160] sm:$0xff]   ;;  %v1673_v0 = vld [vmem:[#allocation7 + $0x18] sm:$0xff]  }
  0x6b   :  { %1433 = vmatprep.subr.bf16.mxu1 %v1642_v17  ;;  %v265_v46 = vpack.c.bf16 %v248_v43, %v248_v43  ;;  %v249_v47 = vcombine.high %v247_v44, %v247_v44  ;;  %v266_v49 = vpack.c.bf16 %v247_v44, %v247_v44  ;;  %v1675_v1 = vld [vmem:[#allocation7 + $0x60] sm:$0xff]   ;;  %v1678_v3 = vld [vmem:[#allocation8 + $0x168] sm:$0xff]   ;;  %v1682_v7 = vld [vmem:[#allocation8 + $0x170] sm:$0xff]  }
  0x6c   :  { %v1676_v2 = vld [vmem:[#allocation8 + $0x120] sm:$0xff]   ;;  %v1679_v5 = vld [vmem:[#allocation7 + $0x68] sm:$0xff]   ;;  %v1683_v9 = vld [vmem:[#allocation7 + $0x70] sm:$0xff]  }
  0x6d   :  { %1412 = vmatpush3.bf16.msra.mxu0 %v1643_v18  ;;  %686 = vmatprep.mubr.bf16.mxu0 %v265_v46  ;;  %v267_v51 = vpack.c.bf16 %v249_v47, %v249_v47  ;;  %v1677_v4 = vld [vmem:[#allocation7 + $0x20] sm:$0xff]   ;;  %v1680_v6 = vld [vmem:[#allocation8 + $0x128] sm:$0xff]   ;;  %v1684_v10 = vld [vmem:[#allocation8 + $0x130] sm:$0xff]  }
  0x6e   :  { %1434 = vmatpush3.bf16.msra.mxu1 %v1644_v19  ;;  %1413 = vmatprep.subr.bf16.mxu0 %v1645_v20  ;;  %v1681_v8 = vld [vmem:[#allocation7 + $0x28] sm:$0xff]   ;;  %v1686_v11 = vld [vmem:[#allocation8 + $0x178] sm:$0xff]   ;;  %v1685_v12 = vld [vmem:[#allocation7 + $0x30] sm:$0xff]  }
  0x6f   :  { %1435 = vmatprep.subr.bf16.mxu1 %v1646_v21  ;;  %726 = vmatprep.mubr.bf16.mxu1 %v267_v51  ;;  %v1687_v13 = vld [vmem:[#allocation7 + $0x78] sm:$0xff]   ;;  %v92_v15 = vld [vmem:[#allocation2] sm:$0xff]  ;;  %v1690_v20 = vld [vmem:[#allocation7 + $0xc0] sm:$0xff]  }
  0x70   :  { %v1304_v14 = vld.sshfl [vmem:[#allocation5 + $0x8] sm:$0x33 pattern:$0x76325410]  ;;  %v103_v18 = vrot.slane %v92_v15, %v1983_v35  ;;  %v96_v19 = vcombine.high %v92_v15, %v92_v15  ;;  %v1699_v38 = vld [vmem:[#allocation7 + $0x150] sm:$0xff]   ;;  %v1706_v44 = vld [vmem:[#allocation7 + $0xe0] sm:$0xff]  }
  0x71   :  { %1414 = vmatpush3.bf16.msra.mxu0 %v1647_v25  ;;  %v1688_v16 = vld [vmem:[#allocation8 + $0x138] sm:$0xff]   ;;  %v257_v17 = vcombine.high %v1304_v14, %v1304_v14  ;;  %v268_v25 = vpack.c.bf16 %v1304_v14, %v1304_v14  ;;  %v1700_v39 = vld [vmem:[#allocation7 + $0x90] sm:$0xff]   ;;  %v1707_v46 = vld [vmem:[#allocation7 + $0x160] sm:$0xff]  }
  0x72   :  { %1436 = vmatpush3.bf16.msra.mxu1 %v1648_v26  ;;  %1415 = vmatprep.subr.bf16.mxu0 %v1649_v27  ;;  %v1689_v21 = vld [vmem:[#allocation7 + $0x38] sm:$0xff]   ;;  %v111_v23 = vcombine.high %v103_v18, %v103_v18  ;;  %v1989_v24 = vrot.slane %v96_v19, %v1983_v35  ;;  %v1691_v26 = vld [vmem:[#allocation7 + $0x140] sm:$0xff]   ;;  %v127_v30 = vpack.c.bf16 %v103_v18, %v103_v18  ;;  %v1696_v35 = vld [vmem:[#allocation7 + $0x88] sm:$0xff]  }
  0x73   :  { %1437 = vmatprep.subr.bf16.mxu1 %v1650_v28  ;;  %v269_v22 = vpack.c.bf16 %v257_v17, %v257_v17  ;;  %v1692_v28 = vld [vmem:[#allocation7 + $0x80] sm:$0xff]   ;;  %v1702_v40 = vld [vmem:[#allocation7 + $0xd8] sm:$0xff]   ;;  %v1712_v51 = vld [vmem:[#allocation7 + $0xa8] sm:$0xff]  }
  0x74   :  { %v128_v27 = vpack.c.bf16 %v111_v23, %v111_v23  ;;  %v112_v29 = vcombine.high %v1989_v24, %v1989_v24  ;;  %v1704_v43 = vld [vmem:[#allocation7 + $0x98] sm:$0xff]   ;;  %v1708_v47 = vld [vmem:[#allocation7 + $0xa0] sm:$0xff]   ;;  %v1201_v18 = vld [vmem:[#allocation10 + $0x50] sm:$0xff] }
  0x75   :  { %1416 = vmatpush3.bf16.msra.mxu0 %v1651_v31  ;;  %v1694_v31 = vld [vmem:[#allocation7 + $0xc8] sm:$0xff]   ;;  %v1199_v15 = vld [vmem:[#allocation10 + $0x40] sm:$0xff]  ;;  %v1202_v19 = vld [vmem:[#allocation10 + $0x58] sm:$0xff] }
  0x76   :  { %1438 = vmatpush3.bf16.msra.mxu1 %v1652_v32  ;;  %1417 = vmatprep.subr.bf16.mxu0 %v1653_v33  ;;  %v1693_v32 = vld [vmem:[#allocation7 + $0x100] sm:$0xff]   ;;  %v130_v33 = vpack.c.bf16 %v112_v29, %v112_v29 }
  0x77   :  { %1439 = vmatprep.subr.bf16.mxu1 %v1654_v34  ;;  %v1695_v34 = vld [vmem:[#allocation7 + $0x148] sm:$0xff]  }
  0x79   :  { %1418 = vmatpush3.bf16.msra.mxu0 %v1655_v36  ;;  %v1698_v36 = vld [vmem:[#allocation7 + $0xd0] sm:$0xff]  }
  0x7a   :  { %1440 = vmatpush3.bf16.msra.mxu1 %v1656_v37  ;;  %1447 = vmatprep.subr.bf16.mxu0 %v1658_v41  ;;  %v1697_v37 = vld [vmem:[#allocation7 + $0x108] sm:$0xff]   ;;  %v1701_v41 = vld [vmem:[#allocation7 + $0x110] sm:$0xff]  }
  0x7b   :  { %1469 = vmatprep.subr.bf16.mxu1 %v1659_v42  ;;  %v1703_v42 = vld [vmem:[#allocation7 + $0x158] sm:$0xff]  }
  0x7c   :  { %687 = vmatmul.mubr.bf16.vlgmr.msra.gmra.mrb[0].mxu0 %v264_v45  ;;  %v1705_v45 = vld [vmem:[#allocation7 + $0x118] sm:$0xff]  }
  0x7d   :  { %1448 = vmatpush3.bf16.msra.mxu0 %v1660_v48  ;;  %727 = vmatmul.mubr.bf16.vlgmr.msra.gmra.mrb[0].mxu1 %v266_v49  ;;  %v1710_v48 = vld [vmem:[#allocation7 + $0xe8] sm:$0xff]   ;;  %v1709_v49 = vld [vmem:[#allocation7 + $0x120] sm:$0xff]  }
  0x7e   :  { %1449 = vmatprep.subr.bf16.mxu0 %v1662_v50  ;;  %1470 = vmatpush3.bf16.msra.mxu1 %v1661_v52  ;;  %v1711_v50 = vld [vmem:[#allocation7 + $0x168] sm:$0xff]   ;;  %v1714_v52 = vld [vmem:[#allocation7 + $0xf0] sm:$0xff]  }
  0x7f   :  { %1471 = vmatprep.subr.bf16.mxu1 %v1663_v53  ;;  %766 = vmatprep.mubr.bf16.mxu0 %v269_v22  ;;  %v1713_v53 = vld [vmem:[#allocation7 + $0x128] sm:$0xff]  }
  0x80   :  { %1094 = vmatprep.mubr.bf16.mxu1 %v128_v27  ;;  %v1204_v22 = vld [vmem:[#allocation10 + $0x68] sm:$0xff]  ;;  %v1875_v27 = vmov 0.0  }
  0x81   :  { %1450 = vmatpush3.bf16.msra.mxu0 %v1664_v54  ;;  %v1715_v54 = vld [vmem:[#allocation7 + $0x170] sm:$0xff]  }
  0x82   :  { %1451 = vmatprep.subr.bf16.mxu0 %v1666_v55  ;;  %1472 = vmatpush3.bf16.msra.mxu1 %v1665_v56  ;;  %v1716_v55 = vld [vmem:[#allocation7 + $0xb0] sm:$0xff]   ;;  %v1718_v56 = vld [vmem:[#allocation7 + $0xf8] sm:$0xff]  }
  0x83   :  { %1473 = vmatprep.subr.bf16.mxu1 %v1667_v57  ;;  %v1717_v57 = vld [vmem:[#allocation7 + $0x130] sm:$0xff]  }
  0x85   :  { %1452 = vmatpush3.bf16.msra.mxu0 %v1668_v58  ;;  %v1719_v58 = vld [vmem:[#allocation7 + $0x178] sm:$0xff]  }
  0x86   :  { %1453 = vmatprep.subr.bf16.mxu0 %v1670_v59  ;;  %1474 = vmatpush3.bf16.msra.mxu1 %v1669_v60  ;;  %v1720_v59 = vld [vmem:[#allocation7 + $0xb8] sm:$0xff]   ;;  %v1303_v60 = vld.sshfl [vmem:[#allocation2 + $0x8] sm:$0x33 pattern:$0x76325410] }
  0x87   :  { %1475 = vmatprep.subr.bf16.mxu1 %v1671_v61  ;;  %v120_v61 = vcombine.high %v1303_v60, %v1303_v60 }
  0x89   :  { %1454 = vmatpush3.bf16.msra.mxu0 %v1672_v62  ;;  %v1721_v62 = vld [vmem:[#allocation7 + $0x138] sm:$0xff]  }
  0x8a   :  { %1455 = vmatprep.subr.bf16.mxu0 %v1674_v63  ;;  %1476 = vmatpush3.bf16.msra.mxu1 %v1673_v0  ;;  %v132_v63 = vpack.c.bf16 %v120_v61, %v120_v61  ;;  %v129_v0 = vpack.c.bf16 %v1989_v24, %v1989_v24  ;;  %v1205_v24 = vld [vmem:[#allocation10 + $0x70] sm:$0xff]  ;;  %v1401_v61 = vld [vmem:[%s2017_s4] ss:$0 sm:$0xff]  ;;  %s1837_s4 = scalar_lea.vmem %s1293_s18, 32 }
  0x8b   :  { %1477 = vmatprep.subr.bf16.mxu1 %v1675_v1  ;;  %v131_v1 = vpack.c.bf16 %v1303_v60, %v1303_v60  ;;  %p1839_p0 = scmp.lt.s32.totalorder %s1837_s4, %s1833_s19 }
  0x8d   :  { %1456 = vmatpush3.bf16.msra.mxu0 %v1676_v2  ;;  %v1191_v2 = vld [vmem:[#allocation10] sm:$0xff]  ;;  %p1840_p1 = por %p1839_p0, %p1838_p13 }
  0x8e   :  { %1457 = vmatprep.subr.bf16.mxu0 %v1678_v3  ;;  %1478 = vmatpush3.bf16.msra.mxu1 %v1677_v4  ;;  %v1192_v3 = vld [vmem:[#allocation10 + $0x8] sm:$0xff]  ;;  %v1193_v4 = vld [vmem:[#allocation10 + $0x10] sm:$0xff] }
  0x8f   :  { %1479 = vmatprep.subr.bf16.mxu1 %v1679_v5  ;;  %v1873_v5 = vmov 0.0|0.0   ;;  %p1841_p2 = pnand %p1840_p1, %p1834_p12 }
  0x91   :  { %1458 = vmatpush3.bf16.msra.mxu0 %v1680_v6  ;;  %v1588_v6 = vpack.c.bf16 %v1192_v3, %v1191_v2  ;;  %v1402_v2 = vld [vmem:[%s2019_s6] ss:$0 sm:$0xff] }
  0x92   :  { %1459 = vmatprep.subr.bf16.mxu0 %v1682_v7  ;;  %1480 = vmatpush3.bf16.msra.mxu1 %v1681_v8  ;;  %v1194_v7 = vld [vmem:[#allocation10 + $0x18] sm:$0xff] }
  0x93   :  { %1481 = vmatprep.subr.bf16.mxu1 %v1683_v9  ;;  %v1591_v8 = vpack.c.bf16 %v1194_v7, %v1193_v4  ;;  %v1195_v9 = vld [vmem:[#allocation10 + $0x20] sm:$0xff] }
  0x95   :  { %1460 = vmatpush3.bf16.msra.mxu0 %v1684_v10  ;;  %v1196_v10 = vld [vmem:[#allocation10 + $0x28] sm:$0xff] }
  0x96   :  { %1461 = vmatprep.subr.bf16.mxu0 %v1686_v11  ;;  %1482 = vmatpush3.bf16.msra.mxu1 %v1685_v12  ;;  %v1594_v11 = vpack.c.bf16 %v1196_v10, %v1195_v9  ;;  %v1197_v12 = vld [vmem:[#allocation10 + $0x30] sm:$0xff] }
  0x97   :  { %1483 = vmatprep.subr.bf16.mxu1 %v1687_v13  ;;  %v1198_v13 = vld [vmem:[#allocation10 + $0x38] sm:$0xff] }
  0x98   :  { %v1597_v14 = vpack.c.bf16 %v1198_v13, %v1197_v12 }
  0x99   :  { %1462 = vmatpush3.bf16.msra.mxu0 %v1688_v16  ;;  %v1200_v16 = vld [vmem:[#allocation10 + $0x48] sm:$0xff] }
  0x9a   :  { %1491 = vmatprep.subr.bf16.mxu0 %v1690_v20  ;;  %1484 = vmatpush3.bf16.msra.mxu1 %v1689_v21  ;;  %v1600_v17 = vpack.c.bf16 %v1200_v16, %v1199_v15  ;;  %v1603_v20 = vpack.c.bf16 %v1202_v19, %v1201_v18  ;;  %v1203_v21 = vld [vmem:[#allocation10 + $0x60] sm:$0xff] }
  0x9b   :  { %1513 = vmatprep.subr.bf16.mxu1 %v1691_v26  ;;  %v1606_v23 = vpack.c.bf16 %v1204_v22, %v1203_v21 }
  0x9c   :  { %767 = vmatmul.mubr.bf16.vlgmr.msra.gmra.mrb[4].mxu0 %v268_v25  ;;  %v1206_v25 = vld [vmem:[#allocation10 + $0x78] sm:$0xff] }
  0x9d   :  { %1492 = vmatpush3.bf16.msra.mxu0 %v1692_v28  ;;  %1134 = vmatprep.mubr.bf16.mxu0 %v130_v33  ;;  %v1609_v26 = vpack.c.bf16 %v1206_v25, %v1205_v24 }
  0x9e   :  { %1095 = vmatmul.mubr.bf16.vlgmr.msra.gmra.mrb[4].mxu1 %v127_v30  ;;  %1493 = vmatprep.subr.bf16.mxu0 %v1694_v31 }
  0x9f   :  { %1514 = vmatpush3.bf16.msra.mxu1 %v1693_v32  ;;  %1174 = vmatprep.mubr.bf16.mxu1 %v132_v63 }
  0xa0   :  { %1515 = vmatprep.subr.bf16.mxu1 %v1695_v34 }
  0xa1   :  { %1494 = vmatpush3.bf16.msra.mxu0 %v1696_v35 }
  0xa2   :  { %1495 = vmatprep.subr.bf16.mxu0 %v1698_v36 }
  0xa3   :  { %1516 = vmatpush3.bf16.msra.mxu1 %v1697_v37 }
  0xa4   :  { %1517 = vmatprep.subr.bf16.mxu1 %v1699_v38 }
  0xa5   :  { %1496 = vmatpush3.bf16.msra.mxu0 %v1700_v39 }
  0xa6   :  { %1497 = vmatprep.subr.bf16.mxu0 %v1702_v40 }
  0xa7   :  { %1518 = vmatpush3.bf16.msra.mxu1 %v1701_v41 }
  0xa8   :  { %1519 = vmatprep.subr.bf16.mxu1 %v1703_v42 }
  0xa9   :  { %1498 = vmatpush3.bf16.msra.mxu0 %v1704_v43 }
  0xaa   :  { %1499 = vmatprep.subr.bf16.mxu0 %v1706_v44 }
  0xab   :  { %1520 = vmatpush3.bf16.msra.mxu1 %v1705_v45 }
  0xac   :  { %1521 = vmatprep.subr.bf16.mxu1 %v1707_v46 }
  0xad   :  { %1500 = vmatpush3.bf16.msra.mxu0 %v1708_v47 }
  0xae   :  { %1501 = vmatprep.subr.bf16.mxu0 %v1710_v48 }
  0xaf   :  { %1522 = vmatpush3.bf16.msra.mxu1 %v1709_v49 }
  0xb0   :  { %1523 = vmatprep.subr.bf16.mxu1 %v1711_v50 }
  0xb1   :  { %1502 = vmatpush3.bf16.msra.mxu0 %v1712_v51 }
  0xb2   :  { %1503 = vmatprep.subr.bf16.mxu0 %v1714_v52 }
  0xb3   :  { %1524 = vmatpush3.bf16.msra.mxu1 %v1713_v53 }
  0xb4   :  { %1525 = vmatprep.subr.bf16.mxu1 %v1715_v54 }
  0xb5   :  { %1504 = vmatpush3.bf16.msra.mxu0 %v1716_v55 }
  0xb6   :  { %1505 = vmatprep.subr.bf16.mxu0 %v1718_v56 }
  0xb7   :  { %1526 = vmatpush3.bf16.msra.mxu1 %v1717_v57 }
  0xb8   :  { %1527 = vmatprep.subr.bf16.mxu1 %v1719_v58 }
  0xb9   :  { %1506 = vmatpush3.bf16.msra.mxu0 %v1720_v59 }
  0xba   :  { %1587 = vmatprep.subr.bf16.mxu0 %v1873_v5 }
  0xbb   :  { %1528 = vmatpush3.bf16.msra.mxu1 %v1721_v62 }
  0xbc   :  { %1135 = vmatmul.mubr.bf16.vlgmr.msra.gmra.mrb[8].mxu0 %v129_v0 }
  0xbd   :  { %1589 = vmatpush3.bf16.msra.mxu0 %v1588_v6  ;;  %1584 = vmatprep.mubr.msk.f32.mxu0 %vm1874_vm0, %v1875_v27 }
  0xbe   :  { %1175 = vmatmul.mubr.bf16.vlgmr.msra.gmra.mrb[8].mxu1 %v131_v1  ;;  %1590 = vmatprep.subr.bf16.mxu0 %v1873_v5 }
  0xc1   :  { %1592 = vmatpush3.bf16.msra.mxu0 %v1591_v8 }
  0xc2   :  { %1593 = vmatprep.subr.bf16.mxu0 %v1873_v5 }
  0xc5   :  { %1595 = vmatpush3.bf16.msra.mxu0 %v1594_v11 }
  0xc6   :  { %1596 = vmatprep.subr.bf16.mxu0 %v1873_v5 }
  0xc9   :  { %1598 = vmatpush3.bf16.msra.mxu0 %v1597_v14 }
  0xca   :  { %1599 = vmatprep.subr.bf16.mxu0 %v1873_v5 }
  0xcd   :  { %1601 = vmatpush3.bf16.msra.mxu0 %v1600_v17 }
  0xce   :  { %1602 = vmatprep.subr.bf16.mxu0 %v1873_v5 }
  0xd1   :  { %1604 = vmatpush3.bf16.msra.mxu0 %v1603_v20 }
  0xd2   :  { %1605 = vmatprep.subr.bf16.mxu0 %v1873_v5 }
  0xd5   :  { %1607 = vmatpush3.bf16.msra.mxu0 %v1606_v23 }
  0xd6   :  { %1608 = vmatprep.subr.bf16.mxu0 %v1873_v5 }
  0xd9   :  { %1610 = vmatpush3.bf16.msra.mxu0 %v1609_v26 }
 0x14f   :  { %v1419_v28 = vpop.f32.mrb[0].mxu0 }
 0x150   :  { %v1420_v29 = vpop.f32.mrb[1].mxu0  ;;  %v1441_v30 = vpop.f32.mrb[0].mxu1 }
 0x151   :  { %v1421_v31 = vadd.f32 %v1420_v29, %v1419_v28  ;;  %v1422_v32 = vpop.f32.mrb[2].mxu0  ;;  %v1442_v33 = vpop.f32.mrb[1].mxu1 }
 0x152   :  { %v1423_v34 = vpop.f32.mrb[3].mxu0  ;;  %v1443_v35 = vadd.f32 %v1442_v33, %v1441_v30  ;;  %v1444_v36 = vpop.f32.mrb[2].mxu1 }
 0x153   :  { %v1445_v37 = vpop.f32.mrb[3].mxu1 }
 0x154   :  { %v729_v38 = vadd.f32 %v1443_v35, %v1421_v31 }
 0x16f   :  { %v1463_v39 = vpop.f32.mrb[4].mxu0 }
 0x170   :  { %v1464_v40 = vpop.f32.mrb[5].mxu0 }
 0x171   :  { %v1485_v41 = vpop.f32.mrb[4].mxu1  ;;  %v1465_v42 = vadd.f32 %v1464_v40, %v1463_v39  ;;  %v1466_v43 = vpop.f32.mrb[6].mxu0 }
 0x172   :  { %v1486_v44 = vpop.f32.mrb[5].mxu1  ;;  %v1467_v45 = vpop.f32.mrb[7].mxu0 }
 0x173   :  { %v769_v46 = vadd.f32 %v1465_v42, %v729_v38  ;;  %v1487_v47 = vadd.f32 %v1486_v44, %v1485_v41  ;;  %v1488_v48 = vpop.f32.mrb[6].mxu1 }
 0x174   :  { %v1489_v49 = vpop.f32.mrb[7].mxu1 }
 0x175   :  { %v1097_v50 = vadd.f32 %v1487_v47, %v769_v46 }
 0x18f   :  { %v1507_v51 = vpop.f32.mrb[8].mxu0 }
 0x190   :  { %v1508_v52 = vpop.f32.mrb[9].mxu0 }
 0x191   :  { %v1529_v53 = vpop.f32.mrb[8].mxu1  ;;  %v1509_v54 = vadd.f32 %v1508_v52, %v1507_v51  ;;  %v1510_v55 = vpop.f32.mrb[10].mxu0 }
 0x192   :  { %v1530_v56 = vpop.f32.mrb[9].mxu1  ;;  %v1511_v57 = vpop.f32.mrb[11].mxu0 }
 0x193   :  { %v1137_v58 = vadd.f32 %v1509_v54, %v1097_v50  ;;  %v1531_v59 = vadd.f32 %v1530_v56, %v1529_v53  ;;  %v1532_v60 = vpop.f32.mrb[10].mxu1 }
 0x194   :  { %v1533_v62 = vpop.f32.mrb[11].mxu1 }
 0x195   :  { %v1177_v63 = vadd.f32 %v1531_v59, %v1137_v58 }
 0x197   :  { %v1189_v0 = vadd.f32 %v1401_v61, %v1177_v63 }
 0x199   :  { %v1190_v1 = vmax.f32 %v1189_v0, 0.0 }
 0x19b   :  { %1585 = vmatmul.mubr.f32.vlgmr.msra.gmra.mrb[12].mxu0 %v1190_v1 }
 0x26e   :  { %v1280_v3 = vpop.f32.mrb[12].mxu0 }
 0x26f   :  { %v1281_v4 = vadd.f32 %v1402_v2, %v1280_v3  ;;  %v1586_v5 = vpop.f32.mrb[13].mxu0 }
 0x271   :  { %v1284_v6 = vpack.c.bf16 %v1281_v4, %v1281_v4 }
 0x273   :  { %1285 = vst [vmem:[#allocation11] sm:$0x1] %v1284_v6 }
 0x274   :  { %1844 = shalt.err (!%p1841_p2)
}
 0x275   :  { %s1845_s6 = scalar_lea.hbm %s2020_s7, 16 }
 0x276   :  { %p1846_p3 = scmp.ne.s32.totalorder %s2020_s7, %s1845_s6  ;;  %p1849_p4 = scmp.lt.u32.totalorder %s1845_s6, %s2020_s7 }
 0x278   :  { %p1851_p5 = pnand %p1849_p4, %p1846_p3 }
 0x27a   :  { %1854 = shalt.err (!%p1851_p5)
}
 0x27b   :  { %1295 = dma.vmem_to_hbm [thread:$0]  %s1293_s18, 16, %s2020_s7, [#allocation4]  }
 0x27c   :  { %1861 = dma.done.wait [#allocation4], 16  }
 0x27d   :  { %1862 = vsyncadd [#allocation4], 4294967280 }
 0x27e   :  { %1299 = vsyncpa [#allocation3], 1 }
 0x27f   :  { %1300 = vsyncpa [#allocation6], 1 }
 0x280   :  { %1301 = vsyncpa [#allocation9], 1 }
 0x281   :  { %1302 = vsyncpa [#allocation4], 1 }

</bundles_post_ra>
